<compile_context>
chip_gen: v7x
topology: tpu7x:2x2x1
jax: 0.10.0
libtpu: 0.0.40
codegen_flags: <defaults>
</compile_context>

<pallas_src>
import math

import jax
import jax.numpy as jnp
from jax.experimental import pallas as pl
from jax.experimental.pallas import tpu as pltpu

# Feature cardinalities from torch_geometric's molecule `x_map`
# (atomic_num, chirality, degree, formal_charge, num_hs,
#  num_radical_electrons, hybridization, is_aromatic, is_in_ring).
FEAT_DIMS = (119, 4, 11, 12, 9, 5, 8, 2, 2)
NUM_FEATS = len(FEAT_DIMS)

CHUNK = 128            # lane width; also the chunk size of the table layout
D_PAD = 2 * CHUNK      # feature 0 in rows [0,128), features 1..8 in [128,256)


def atom_encoder_kernel(x_ref, tab_ref, o_ref):
    # x_ref:  (tile_n, F) int32  -- indices pre-offset into the chunked table
    # tab_ref:(D_PAD, nhid_pad) f32 -- chunk-aligned concatenated tables
    # o_ref:  (tile_n, nhid_pad) f32
    tile_n = x_ref.shape[0]

    # Chunk 0: only feature 0 lives in rows [0, 128).
    iota0 = jax.lax.broadcasted_iota(jnp.int32, (tile_n, CHUNK), 1)
    oh0 = (x_ref[:, 0:1] == iota0).astype(jnp.float32)

    # Chunk 1: features 1..8 live (disjointly) in rows [128, 256).
    iota1 = iota0 + CHUNK
    mask = x_ref[:, 1:2] == iota1
    for f in range(2, NUM_FEATS):          # static unrolled (7 iterations)
        mask = mask | (x_ref[:, f:f + 1] == iota1)
    oh1 = mask.astype(jnp.float32)

    # Two K=128 MXU contractions against the two table chunks, summed.
    o_ref[...] = (
        jnp.dot(oh0, tab_ref[0:CHUNK, :], preferred_element_type=jnp.float32)
        + jnp.dot(oh1, tab_ref[CHUNK:D_PAD, :], preferred_element_type=jnp.float32)
    )


def atom_encoder(x_offset, table, *, tile_n=256, nhid_out=None):
    """x_offset: [N, F] int32 with chunked feature offsets pre-added.
    table: [D_PAD, nhid_pad] float32 chunk-aligned embedding table.
    Returns [N, nhid_out] (nhid_out defaults to nhid_pad)."""
    N, F = x_offset.shape
    d_pad, nhid_pad = table.shape
    assert d_pad == D_PAD

    # Pad the row count instead of asserting; padded rows read table row 0 and
    # are sliced off below.
    if N <= tile_n:
        tile = max(8, ((N + 7) // 8) * 8)
        n_pad = tile
    else:
        tile = tile_n
        n_pad = ((N + tile - 1) // tile) * tile
    if n_pad != N:
        x_offset = jnp.pad(x_offset, ((0, n_pad - N), (0, 0)))

    out = pl.pallas_call(
        atom_encoder_kernel,
        out_shape=jax.ShapeDtypeStruct((n_pad, nhid_pad), jnp.float32),
        grid_spec=pltpu.PrefetchScalarGridSpec(
            num_scalar_prefetch=0,
            grid=(n_pad // tile,),
            in_specs=[
                pl.BlockSpec((tile, F), lambda i: (i, 0)),
                pl.BlockSpec((D_PAD, nhid_pad), lambda i: (0, 0)),  # resident table
            ],
            out_specs=pl.BlockSpec((tile, nhid_pad), lambda i: (i, 0)),
        ),
        compiler_params=pltpu.CompilerParams(
            dimension_semantics=("parallel",),   # shards row-tiles across v7x TCs
        ),
    )(x_offset, table)

    if nhid_out is None:
        nhid_out = nhid_pad
    return out[:N, :nhid_out]


def make_params(nhid, key):
    """Xavier-uniform init of each embedding table, packed chunk-aligned:
    feature 0 -> rows [0,128), features 1..8 -> rows [128,256).
    Columns are zero-padded to a multiple of 128 for lane-dense output."""
    keys = jax.random.split(key, NUM_FEATS)
    tables = []
    for k, dim in zip(keys, FEAT_DIMS):
        bound = math.sqrt(6.0 / (dim + nhid))
        tables.append(jax.random.uniform(k, (dim, nhid), jnp.float32, -bound, bound))

    nhid_pad = max(CHUNK, ((nhid + CHUNK - 1) // CHUNK) * CHUNK)

    chunk0 = jnp.pad(tables[0], ((0, CHUNK - FEAT_DIMS[0]), (0, 0)))        # (128, nhid)
    rest = jnp.concatenate(tables[1:], axis=0)                              # (53, nhid)
    chunk1 = jnp.pad(rest, ((0, CHUNK - rest.shape[0]), (0, 0)))            # (128, nhid)
    table = jnp.concatenate([chunk0, chunk1], axis=0)                       # (256, nhid)
    table = jnp.pad(table, ((0, 0), (0, nhid_pad - nhid)))                  # (256, nhid_pad)

    offsets = [0, CHUNK]
    for d in FEAT_DIMS[1:-1]:
        offsets.append(offsets[-1] + d)
    offsets = jnp.asarray(offsets, jnp.int32)    # per-feature row offsets in table
    return table, offsets


def reference(x, table, offsets):
    x_off = x + offsets[None, :]
    out = jnp.zeros((x.shape[0], table.shape[1]), jnp.float32)
    for f in range(NUM_FEATS):
        out = out + jnp.take(table, x_off[:, f], axis=0)
    return out


if __name__ == "__main__":
    key = jax.random.PRNGKey(0)
    k_tab, k_x = jax.random.split(key)

    nhid = 32
    N = 16  # number of atoms (nodes)

    table, offsets = make_params(nhid, k_tab)

    # Synthetic node features: column i drawn uniformly in [0, FEAT_DIMS[i]).
    cols = []
    xkeys = jax.random.split(k_x, NUM_FEATS)
    for kk, dim in zip(xkeys, FEAT_DIMS):
        cols.append(jax.random.randint(kk, (N, 1), 0, dim, jnp.int32))
    x = jnp.concatenate(cols, axis=1)  # (N, F) int32

    x_off = (x + offsets[None, :]).astype(jnp.int32)

    out = atom_encoder(x_off, table, nhid_out=nhid)
    out = jax.block_until_ready(out)

    ref = reference(x, table, offsets)[:, :nhid]
    assert out.shape == (N, nhid)
    assert jnp.allclose(out, ref, atol=1e-5, rtol=1e-5)

    print("KERNEL_OK")
</pallas_src>

<mosaic_0001>
module attributes {stable_mosaic.version = 11 : i64} {
  func.func @atom_encoder_kernel(%arg0: i32, %arg1: memref<16x9xi32, #tpu.memory_space<vmem>>, %arg2: memref<256x128xf32, #tpu.memory_space<vmem>>, %arg3: memref<16x128xf32, #tpu.memory_space<vmem>>) attributes {dimension_semantics = [#tpu.dimension_semantics<parallel>], iteration_bounds = array<i64: 1>, scalar_prefetch = 0 : i64, scratch_operands = 0 : i64, tpu.core_type = #tpu.core_type<tc>, window_params = [{transform_indices = @transform_0, window_bounds = array<i64: 16, 9>}, {pipeline_mode = #tpu.pipeline_mode<synchronous>, transform_indices = @transform_1, window_bounds = array<i64: 256, 128>}, {transform_indices = @transform_2, window_bounds = array<i64: 16, 128>}]} {
    %0 = tpu.iota {dimensions = array<i32: 1>} : vector<16x128xi32>
    %c0 = arith.constant 0 : index
    %c0_0 = arith.constant 0 : index
    %1 = vector.load %arg1[%c0, %c0_0] : memref<16x9xi32, #tpu.memory_space<vmem>>, vector<16x1xi32>
    %2 = vector.broadcast %1 : vector<16x1xi32> to vector<16x128xi32>
    %3 = arith.cmpi eq, %2, %0 : vector<16x128xi32>
    %4 = arith.extui %3 : vector<16x128xi1> to vector<16x128xi32>
    %5 = arith.sitofp %4 : vector<16x128xi32> to vector<16x128xf32>
    %c128_i32 = arith.constant 128 : i32
    %6 = vector.broadcast %c128_i32 : i32 to vector<16x128xi32>
    %7 = arith.addi %0, %6 : vector<16x128xi32>
    %c0_1 = arith.constant 0 : index
    %c1 = arith.constant 1 : index
    %8 = vector.load %arg1[%c0_1, %c1] : memref<16x9xi32, #tpu.memory_space<vmem>>, vector<16x1xi32>
    %9 = vector.broadcast %8 : vector<16x1xi32> to vector<16x128xi32>
    %10 = arith.cmpi eq, %9, %7 : vector<16x128xi32>
    %c0_2 = arith.constant 0 : index
    %c2 = arith.constant 2 : index
    %11 = vector.load %arg1[%c0_2, %c2] : memref<16x9xi32, #tpu.memory_space<vmem>>, vector<16x1xi32>
    %12 = vector.broadcast %11 : vector<16x1xi32> to vector<16x128xi32>
    %13 = arith.cmpi eq, %12, %7 : vector<16x128xi32>
    %14 = arith.ori %10, %13 : vector<16x128xi1>
    %c0_3 = arith.constant 0 : index
    %c3 = arith.constant 3 : index
    %15 = vector.load %arg1[%c0_3, %c3] : memref<16x9xi32, #tpu.memory_space<vmem>>, vector<16x1xi32>
    %16 = vector.broadcast %15 : vector<16x1xi32> to vector<16x128xi32>
    %17 = arith.cmpi eq, %16, %7 : vector<16x128xi32>
    %18 = arith.ori %14, %17 : vector<16x128xi1>
    %c0_4 = arith.constant 0 : index
    %c4 = arith.constant 4 : index
    %19 = vector.load %arg1[%c0_4, %c4] : memref<16x9xi32, #tpu.memory_space<vmem>>, vector<16x1xi32>
    %20 = vector.broadcast %19 : vector<16x1xi32> to vector<16x128xi32>
    %21 = arith.cmpi eq, %20, %7 : vector<16x128xi32>
    %22 = arith.ori %18, %21 : vector<16x128xi1>
    %c0_5 = arith.constant 0 : index
    %c5 = arith.constant 5 : index
    %23 = vector.load %arg1[%c0_5, %c5] : memref<16x9xi32, #tpu.memory_space<vmem>>, vector<16x1xi32>
    %24 = vector.broadcast %23 : vector<16x1xi32> to vector<16x128xi32>
    %25 = arith.cmpi eq, %24, %7 : vector<16x128xi32>
    %26 = arith.ori %22, %25 : vector<16x128xi1>
    %c0_6 = arith.constant 0 : index
    %c6 = arith.constant 6 : index
    %27 = vector.load %arg1[%c0_6, %c6] : memref<16x9xi32, #tpu.memory_space<vmem>>, vector<16x1xi32>
    %28 = vector.broadcast %27 : vector<16x1xi32> to vector<16x128xi32>
    %29 = arith.cmpi eq, %28, %7 : vector<16x128xi32>
    %30 = arith.ori %26, %29 : vector<16x128xi1>
    %c0_7 = arith.constant 0 : index
    %c7 = arith.constant 7 : index
    %31 = vector.load %arg1[%c0_7, %c7] : memref<16x9xi32, #tpu.memory_space<vmem>>, vector<16x1xi32>
    %32 = vector.broadcast %31 : vector<16x1xi32> to vector<16x128xi32>
    %33 = arith.cmpi eq, %32, %7 : vector<16x128xi32>
    %34 = arith.ori %30, %33 : vector<16x128xi1>
    %c0_8 = arith.constant 0 : index
    %c8 = arith.constant 8 : index
    %35 = vector.load %arg1[%c0_8, %c8] : memref<16x9xi32, #tpu.memory_space<vmem>>, vector<16x1xi32>
    %36 = vector.broadcast %35 : vector<16x1xi32> to vector<16x128xi32>
    %37 = arith.cmpi eq, %36, %7 : vector<16x128xi32>
    %38 = arith.ori %34, %37 : vector<16x128xi1>
    %39 = arith.extui %38 : vector<16x128xi1> to vector<16x128xi32>
    %40 = arith.sitofp %39 : vector<16x128xi32> to vector<16x128xf32>
    %c0_9 = arith.constant 0 : index
    %c0_10 = arith.constant 0 : index
    %41 = vector.load %arg2[%c0_9, %c0_10] : memref<256x128xf32, #tpu.memory_space<vmem>>, vector<128x128xf32>
    %cst = arith.constant dense<0.000000e+00> : vector<16x128xf32>
    %42 = tpu.matmul %5, %41, %cst {dimension_numbers = #tpu.dot_dimension_numbers<[1], [0], [0], [1], [0, 0, 1, 1], [], []>} : vector<16x128xf32>, vector<128x128xf32>, vector<16x128xf32> -> vector<16x128xf32>
    %c128 = arith.constant 128 : index
    %c0_11 = arith.constant 0 : index
    %43 = vector.load %arg2[%c128, %c0_11] : memref<256x128xf32, #tpu.memory_space<vmem>>, vector<128x128xf32>
    %cst_12 = arith.constant dense<0.000000e+00> : vector<16x128xf32>
    %44 = tpu.matmul %40, %43, %cst_12 {dimension_numbers = #tpu.dot_dimension_numbers<[1], [0], [0], [1], [0, 0, 1, 1], [], []>} : vector<16x128xf32>, vector<128x128xf32>, vector<16x128xf32> -> vector<16x128xf32>
    %45 = arith.addf %42, %44 : vector<16x128xf32>
    %c0_13 = arith.constant 0 : index
    %c0_14 = arith.constant 0 : index
    %46 = vector.load %arg3[%c0_13, %c0_14] : memref<16x128xf32, #tpu.memory_space<vmem>>, vector<16x128xf32>
    tpu.vector_store %arg3[%c0_13, %c0_14], %45 {strides = array<i32>} : memref<16x128xf32, #tpu.memory_space<vmem>>, vector<16x128xf32>,
    return
  }
  func.func @transform_0(%arg0: i32) -> (i32, i32) {
    %c0_i32 = arith.constant 0 : i32
    %c0_i32_0 = arith.constant 0 : i32
    return %arg0, %c0_i32 : i32, i32
  }
  func.func @transform_1(%arg0: i32) -> (i32, i32) {
    %c0_i32 = arith.constant 0 : i32
    %c0_i32_0 = arith.constant 0 : i32
    %c0_i32_1 = arith.constant 0 : i32
    return %c0_i32, %c0_i32_0 : i32, i32
  }
  func.func @transform_2(%arg0: i32) -> (i32, i32) {
    %c0_i32 = arith.constant 0 : i32
    %c0_i32_0 = arith.constant 0 : i32
    return %arg0, %c0_i32 : i32, i32
  }
}

</mosaic_0001>

<bundles_post_ra>
// kernel: tpu_custom_call.1
= control target key start
LH: loop header
LB: loop body
LE: loop exit
PB: predicated region body
PF: predicated region fallthrough
CT: control target
= control target key end

     0   :  { %7 = vsyncpa [#allocation3], 0  ;;  %s722_s0 = inlined_call_operand.hbm [shape: s32[16,9], index: 0, kind: input, shape index: {}]   ;;  %s723_s1 = inlined_call_operand.hbm [shape: f32[256,128], index: 1, kind: input, shape index: {}]   ;;  %s724_s2 = inlined_call_operand.hbm [shape: f32[16,128], index: 2, kind: output, shape index: {}]  }
   0x1   :  { %8 = vsyncpa [#allocation6], 0 }
   0x2   :  { %9 = vsyncpa [#allocation4], 0  ;;  %s624_s9 = smov [#allocation2]   ;;  %s552_s13 = scalar_lea.hbm %s722_s0, 256 }
   0x3   :  { %s15_s10 = sshll.u32 %s624_s9, 4  ;;  %p553_p0 = scmp.ne.s32.totalorder %s722_s0, %s552_s13  ;;  %s16_s10 = int_to_ptr.vmem [resolvable:$true] %s15_s10 }
   0x4   :  { %p556_p1 = scmp.lt.u32.totalorder %s552_s13, %s722_s0 }
   0x6   :  { %p558_p2 = pnand %p556_p1, %p553_p0 }
   0x8   :  { %561 = shalt.err (!%p558_p2)
}
   0x9   :  { %s562_s18 = scalar_lea.vmem %s16_s10, 256  ;;  %p567_p4 = scmp.lt.s32.totalorder %s16_s10, %s16_s10 }
   0xa   :  { %p563_p3 = scmp.ne.s32.totalorder %s16_s10, %s562_s18  ;;  %p568_p5 = scmp.lt.s32.totalorder %s562_s18, %s562_s18 }
   0xc   :  { %p569_p6 = por %p568_p5, %p567_p4 }
   0xe   :  { %p570_p7 = pnand %p569_p6, %p563_p3 }
  0x10   :  { %573 = shalt.err (!%p570_p7)
}
  0x11   :  { %s625_s19 = smov 128   ;;  %s626_s20 = smov 8  }
  0x12   :  { %21 = dma.hbm_to_vmem [thread:$0]  %s722_s0, 256, %s16_s10, [#allocation3], %s625_s19, %s625_s19, %s626_s20  }
  0x13   :  { %s627_s23 = smov [#allocation5]   ;;  %s574_s27 = scalar_lea.hbm %s723_s1, 4096 }
  0x14   :  { %s27_s24 = sshll.u32 %s627_s23, 4  ;;  %p575_p8 = scmp.ne.s32.totalorder %s723_s1, %s574_s27  ;;  %s28_s24 = int_to_ptr.vmem [resolvable:$true] %s27_s24 }
  0x15   :  { %p578_p9 = scmp.lt.u32.totalorder %s574_s27, %s723_s1 }
  0x17   :  { %p580_p10 = pnand %p578_p9, %p575_p8 }
  0x19   :  { %583 = shalt.err (!%p580_p10)
}
  0x1a   :  { %s584_s4 = scalar_lea.vmem %s28_s24, 4096  ;;  %p589_p12 = scmp.lt.s32.totalorder %s28_s24, %s28_s24 }
  0x1b   :  { %p585_p11 = scmp.ne.s32.totalorder %s28_s24, %s584_s4  ;;  %p590_p13 = scmp.lt.s32.totalorder %s584_s4, %s584_s4 }
  0x1d   :  { %p591_p0 = por %p590_p13, %p589_p12 }
  0x1f   :  { %p592_p1 = pnand %p591_p0, %p585_p11 }
  0x21   :  { %595 = shalt.err (!%p592_p1)
}
  0x22   :  { %33 = dma.hbm_to_vmem [thread:$0]  %s723_s1, 4096, %s28_s24, [#allocation6], %s625_s19, %s625_s19, %s626_s20  }
  0x23   :  { %618 = dma.done.wait [#allocation3], 256  }
  0x24   :  { %619 = vsyncadd [#allocation3], 4294967040 }
  0x25   :  { %620 = dma.done.wait [#allocation6], 4096  }
  0x26   :  { %621 = vsyncadd [#allocation6], 4294963200  ;;  %v628_v0 = vmov 1   ;;  %v685_v1 = vld [vmem:[#allocation2 + $0x8] sm:$0xff]  ;;  %v687_v2 = vld [vmem:[#allocation2] sm:$0xff]  ;;  %v629_v3 = vmov 2  }
  0x27   :  { %537 = vset.pattern.permute.xlu1 %v628_v0  ;;  %535 = vset.pattern.permute.xlu0 %v628_v0  ;;  %v630_v4 = vmov 3   ;;  %v155_v5 = vld [vmem:[#allocation5 + $0x80] sm:$0xff]  ;;  %v156_v6 = vld [vmem:[#allocation5 + $0x88] sm:$0xff]  ;;  %v631_v8 = vmov 4   ;;  %v632_v9 = vmov 5   ;;  %v157_v10 = vld [vmem:[#allocation5 + $0x90] sm:$0xff]  ;;  %v40_v0 = vlaneseq }
  0x28   :  { %61 = vperm.xlu1 %537, %v685_v1   ;;  %58 = vperm.xlu0 %535, %v687_v2   ;;  %v453_v7 = vpack.c.bf16 %v156_v6, %v155_v5  ;;  %v158_v11 = vld [vmem:[#allocation5 + $0x98] sm:$0xff]  ;;  %v139_v12 = vld [vmem:[#allocation5] sm:$0xff]  ;;  %v140_v14 = vld [vmem:[#allocation5 + $0x8] sm:$0xff]  ;;  %v633_v16 = vmov 6   ;;  %v634_v23 = vmov 8   ;;  %v635_v33 = vmov 0  }
  0x29   :  { %v457_v13 = vpack.c.bf16 %v158_v11, %v157_v10  ;;  %v485_v15 = vpack.c.bf16 %v140_v14, %v139_v12  ;;  %v159_v17 = vld [vmem:[#allocation5 + $0xa0] sm:$0xff]  ;;  %v160_v18 = vld [vmem:[#allocation5 + $0xa8] sm:$0xff]  ;;  %v141_v19 = vld [vmem:[#allocation5 + $0x10] sm:$0xff]  ;;  %v636_v40 = vmov 7   ;;  %s639_s1 = smov [#allocation7]  }
  0x2a   :  { %454 = vmatprep.subr.bf16.mxu1 %v453_v7  ;;  %v461_v20 = vpack.c.bf16 %v160_v18, %v159_v17  ;;  %v142_v21 = vld [vmem:[#allocation5 + $0x18] sm:$0xff]  ;;  %v161_v24 = vld [vmem:[#allocation5 + $0xb0] sm:$0xff]  ;;  %v143_v26 = vld [vmem:[#allocation5 + $0x20] sm:$0xff]  ;;  %s328_s6 = sshll.u32 %s639_s1, 4  ;;  %s329_s6 = int_to_ptr.vmem [resolvable:$true] %s328_s6 }
  0x2b   :  { %456 = vmatpush3.bf16.msra.mxu1 %v453_v7  ;;  %486 = vmatprep.subr.bf16.mxu0 %v485_v15  ;;  %v489_v22 = vpack.c.bf16 %v142_v21, %v141_v19  ;;  %v162_v25 = vld [vmem:[#allocation5 + $0xb8] sm:$0xff]  ;;  %v144_v28 = vld [vmem:[#allocation5 + $0x28] sm:$0xff]  ;;  %v163_v30 = vld [vmem:[#allocation5 + $0xc0] sm:$0xff]  ;;  %v638_v19 = vmov 1.0   ;;  %s596_s7 = scalar_lea.vmem %s329_s6, 256  ;;  %p601_p3 = scmp.lt.s32.totalorder %s329_s6, %s329_s6 }
  0x2c   :  { %538 = vset.pattern.permute.xlu1 %v629_v3  ;;  %536 = vset.pattern.permute.xlu0 %v629_v3  ;;  %v465_v27 = vpack.c.bf16 %v162_v25, %v161_v24  ;;  %v493_v29 = vpack.c.bf16 %v144_v28, %v143_v26  ;;  %v164_v31 = vld [vmem:[#allocation5 + $0xc8] sm:$0xff]  ;;  %v145_v32 = vld [vmem:[#allocation5 + $0x30] sm:$0xff]  ;;  %v146_v35 = vld [vmem:[#allocation5 + $0x38] sm:$0xff]  ;;  %v41_v3 = vand.u32 127, %v40_v0  ;;  %p597_p2 = scmp.ne.s32.totalorder %s329_s6, %s596_s7  ;;  %p602_p4 = scmp.lt.s32.totalorder %s596_s7, %s596_s7 }
  0x2d   :  { %69 = vperm.xlu1 %538, %v685_v1   ;;  %66 = vperm.xlu0 %536, %v687_v2   ;;  %v469_v34 = vpack.c.bf16 %v164_v31, %v163_v30  ;;  %v497_v36 = vpack.c.bf16 %v146_v35, %v145_v32  ;;  %v165_v37 = vld [vmem:[#allocation5 + $0xd0] sm:$0xff]  ;;  %v166_v38 = vld [vmem:[#allocation5 + $0xd8] sm:$0xff]  ;;  %v147_v39 = vld [vmem:[#allocation5 + $0x40] sm:$0xff] }
  0x2e   :  { %458 = vmatprep.subr.bf16.mxu1 %v457_v13  ;;  %488 = vmatpush3.bf16.msra.mxu0 %v485_v15  ;;  %v473_v41 = vpack.c.bf16 %v166_v38, %v165_v37  ;;  %v148_v42 = vld [vmem:[#allocation5 + $0x48] sm:$0xff]  ;;  %v167_v44 = vld [vmem:[#allocation5 + $0xe0] sm:$0xff]  ;;  %v149_v46 = vld [vmem:[#allocation5 + $0x50] sm:$0xff]  ;;  %v56_v6 = vadd.s32 128, %v41_v3  ;;  %p603_p5 = por %p602_p4, %p601_p3 }
  0x2f   :  { %460 = vmatpush3.bf16.msra.mxu1 %v457_v13  ;;  %490 = vmatprep.subr.bf16.mxu0 %v489_v22  ;;  %v501_v43 = vpack.c.bf16 %v148_v42, %v147_v39  ;;  %v168_v45 = vld [vmem:[#allocation5 + $0xe8] sm:$0xff]  ;;  %v150_v48 = vld [vmem:[#allocation5 + $0x58] sm:$0xff]  ;;  %v169_v50 = vld [vmem:[#allocation5 + $0xf0] sm:$0xff]  ;;  %v637_v13 = vmov 0.0  }
  0x30   :  { %462 = vmatprep.subr.bf16.mxu1 %v461_v20  ;;  %v477_v47 = vpack.c.bf16 %v168_v45, %v167_v44  ;;  %v505_v49 = vpack.c.bf16 %v150_v48, %v149_v46  ;;  %v170_v51 = vld [vmem:[#allocation5 + $0xf8] sm:$0xff]  ;;  %v151_v52 = vld [vmem:[#allocation5 + $0x60] sm:$0xff]  ;;  %v152_v54 = vld [vmem:[#allocation5 + $0x68] sm:$0xff]  ;;  %p604_p6 = pnand %p603_p5, %p597_p2 }
  0x31   :  { %539 = vset.pattern.permute.xlu1 %v630_v4  ;;  %540 = vset.pattern.permute.xlu0 %v630_v4  ;;  %v481_v53 = vpack.c.bf16 %v170_v51, %v169_v50  ;;  %v509_v55 = vpack.c.bf16 %v152_v54, %v151_v52  ;;  %v153_v56 = vld [vmem:[#allocation5 + $0x70] sm:$0xff]  ;;  %v154_v57 = vld [vmem:[#allocation5 + $0x78] sm:$0xff] }
  0x32   :  { %76 = vperm.xlu1 %539, %v687_v2   ;;  %79 = vperm.xlu0 %540, %v685_v1   ;;  %v513_v58 = vpack.c.bf16 %v154_v57, %v153_v56 }
  0x33   :  { %464 = vmatpush3.bf16.msra.mxu1 %v461_v20  ;;  %492 = vmatpush3.bf16.msra.mxu0 %v489_v22 }
  0x34   :  { %466 = vmatprep.subr.bf16.mxu1 %v465_v27  ;;  %494 = vmatprep.subr.bf16.mxu0 %v493_v29 }
  0x36   :  { %541 = vset.pattern.permute.xlu1 %v631_v8  ;;  %542 = vset.pattern.permute.xlu0 %v632_v9 }
  0x37   :  { %86 = vperm.xlu1 %541, %v687_v2   ;;  %96 = vperm.xlu0 %542, %v687_v2  }
  0x38   :  { %468 = vmatpush3.bf16.msra.mxu1 %v465_v27  ;;  %496 = vmatpush3.bf16.msra.mxu0 %v493_v29 }
  0x39   :  { %470 = vmatprep.subr.bf16.mxu1 %v469_v34  ;;  %498 = vmatprep.subr.bf16.mxu0 %v497_v36 }
  0x3b   :  { %89 = vperm.xlu1 %541, %v685_v1   ;;  %545 = vset.pattern.permute.xlu0 %v633_v16 }
  0x3c   :  { %109 = vperm.xlu0 %545, %v685_v1   ;;  %472 = vmatpush3.bf16.msra.mxu1 %v469_v34 }
  0x3d   :  { %500 = vmatpush3.bf16.msra.mxu0 %v497_v36  ;;  %474 = vmatprep.subr.bf16.mxu1 %v473_v41 }
  0x3e   :  { %502 = vmatprep.subr.bf16.mxu0 %v501_v43 }
  0x3f   :  { %543 = vset.pattern.permute.xlu1 %v632_v9 }
  0x40   :  { %99 = vperm.xlu1 %543, %v685_v1   ;;  %547 = vset.pattern.permute.xlu0 %v634_v23 }
  0x41   :  { %126 = vperm.xlu0 %547, %v687_v2   ;;  %476 = vmatpush3.bf16.msra.mxu1 %v473_v41 }
  0x42   :  { %504 = vmatpush3.bf16.msra.mxu0 %v501_v43  ;;  %478 = vmatprep.subr.bf16.mxu1 %v477_v47 }
  0x43   :  { %506 = vmatprep.subr.bf16.mxu0 %v505_v49 }
  0x44   :  { %544 = vset.pattern.permute.xlu1 %v633_v16 }
  0x45   :  { %106 = vperm.xlu1 %544, %v687_v2   ;;  %550 = vset.pattern.permute.xlu0 %v635_v33 }
  0x46   :  { %48 = vperm.xlu0 %550, %v685_v1   ;;  %480 = vmatpush3.bf16.msra.mxu1 %v477_v47 }
  0x47   :  { %508 = vmatpush3.bf16.msra.mxu0 %v505_v49  ;;  %482 = vmatprep.subr.bf16.mxu1 %v481_v53 }
  0x48   :  { %510 = vmatprep.subr.bf16.mxu0 %v509_v55 }
  0x49   :  { %546 = vset.pattern.permute.xlu1 %v636_v40 }
  0x4a   :  { %116 = vperm.xlu1 %546, %v687_v2   ;;  %551 = vset.pattern.permute.xlu0 %v634_v23 }
  0x4b   :  { %484 = vmatpush3.bf16.msra.mxu1 %v481_v53  ;;  %512 = vmatpush3.bf16.msra.mxu0 %v509_v55 }
  0x4c   :  { %514 = vmatprep.subr.bf16.mxu0 %v513_v58 }
  0x4e   :  { %119 = vperm.xlu1 %546, %v685_v1  }
  0x4f   :  { %516 = vmatpush3.bf16.msra.mxu0 %v513_v58 }
  0x52   :  { %548 = vset.pattern.permute.xlu1 %v634_v23 }
  0x53   :  { %129 = vperm.xlu1 %548, %v685_v1  }
  0x57   :  { %549 = vset.pattern.permute.xlu1 %v635_v33 }
  0x58   :  { %45 = vperm.xlu1 %549, %v687_v2  }
  0xa7   :  { %v62_v59 = vpop.permute.xlu1 %61  ;;  %v59_v61 = vpop.permute.xlu0 %58 }
  0xa8   :  { %vm63_vm0 = vcmp.eq.s32.totalorder %v59_v61, %v56_v6  ;;  %vm64_vm9 = vcmp.eq.s32.totalorder %v62_v59, %v56_v6 }
  0xac   :  { %v70_v60 = vpop.permute.xlu1 %69  ;;  %v67_v63 = vpop.permute.xlu0 %66 }
  0xad   :  { %vm71_vm1 = vcmp.eq.s32.totalorder %v67_v63, %v56_v6  ;;  %vm72_vm5 = vcmp.eq.s32.totalorder %v70_v60, %v56_v6 }
  0xae   :  { %vm73_vm2 = vmor %vm63_vm0, %vm71_vm1 }
  0xaf   :  { %vm74_vm11 = vmor %vm64_vm9, %vm72_vm5 }
  0xb1   :  { %v77_v62 = vpop.permute.xlu1 %76  ;;  %v80_v4 = vpop.permute.xlu0 %79 }
  0xb2   :  { %vm81_vm3 = vcmp.eq.s32.totalorder %v77_v62, %v56_v6  ;;  %vm82_vm14 = vcmp.eq.s32.totalorder %v80_v4, %v56_v6 }
  0xb3   :  { %vm83_vm6 = vmor %vm73_vm2, %vm81_vm3 }
  0xb6   :  { %v87_v1 = vpop.permute.xlu1 %86  ;;  %v97_v7 = vpop.permute.xlu0 %96 }
  0xb7   :  { %vm91_vm4 = vcmp.eq.s32.totalorder %v87_v1, %v56_v6  ;;  %vm101_vm8 = vcmp.eq.s32.totalorder %v97_v7, %v56_v6 }
  0xb8   :  { %vm93_vm7 = vmor %vm83_vm6, %vm91_vm4 }
  0xb9   :  { %vm103_vm12 = vmor %vm93_vm7, %vm101_vm8 }
  0xba   :  { %v90_v5 = vpop.permute.xlu1 %89  ;;  %vm84_vm6 = vmor %vm74_vm11, %vm82_vm14 }
  0xbb   :  { %v110_v2 = vpop.permute.xlu0 %109  ;;  %vm92_vm1 = vcmp.eq.s32.totalorder %v90_v5, %v56_v6 }
  0xbc   :  { %vm94_vm5 = vmor %vm84_vm6, %vm92_vm1  ;;  %vm112_vm7 = vcmp.eq.s32.totalorder %v110_v2, %v56_v6 }
  0xbf   :  { %v100_v8 = vpop.permute.xlu1 %99 }
  0xc0   :  { %v127_v10 = vpop.permute.xlu0 %126  ;;  %vm102_vm3 = vcmp.eq.s32.totalorder %v100_v8, %v56_v6 }
  0xc1   :  { %vm131_vm13 = vcmp.eq.s32.totalorder %v127_v10, %v56_v6  ;;  %vm104_vm9 = vmor %vm94_vm5, %vm102_vm3 }
  0xc4   :  { %v107_v9 = vpop.permute.xlu1 %106 }
  0xc5   :  { %vm111_vm10 = vcmp.eq.s32.totalorder %v107_v9, %v56_v6  ;;  %v49_v16 = vpop.permute.xlu0 %48 }
  0xc6   :  { %vm113_vm15 = vmor %vm103_vm12, %vm111_vm10 }
  0xc7   :  { %vm114_vm10 = vmor %vm104_vm9, %vm112_vm7 }
  0xc9   :  { %v117_v11 = vpop.permute.xlu1 %116 }
  0xca   :  { %vm121_vm0 = vcmp.eq.s32.totalorder %v117_v11, %v56_v6 }
  0xcb   :  { %vm123_vm2 = vmor %vm113_vm15, %vm121_vm0 }
  0xcc   :  { %vm133_vm4 = vmor %vm123_vm2, %vm131_vm13  ;;  %vm51_vm2 = vcmp.eq.s32.totalorder %v49_v16, %v41_v3 }
  0xcd   :  { %v120_v12 = vpop.permute.xlu1 %119  ;;  %v343_v14 = vsel %vm133_vm4, 1.0, %v637_v13 }
  0xce   :  { %415 = vmatprep.mubr.f32.mxu1 %v343_v14  ;;  %vm122_vm8 = vcmp.eq.s32.totalorder %v120_v12, %v56_v6 }
  0xcf   :  { %vm124_vm12 = vmor %vm114_vm10, %vm122_vm8 }
  0xd2   :  { %v130_v15 = vpop.permute.xlu1 %129 }
  0xd3   :  { %vm132_vm0 = vcmp.eq.s32.totalorder %v130_v15, %v56_v6 }
  0xd4   :  { %vm134_vm15 = vmor %vm124_vm12, %vm132_vm0 }
  0xd5   :  { %v344_v17 = vsel %vm134_vm15, 1.0, %v637_v13 }
  0xd6   :  { %416 = vmatmul.mubr.f32.vlgmr.msra.gmra.mrb[0].mxu1 %v344_v17 }
  0xd7   :  { %v46_v18 = vpop.permute.xlu1 %45 }
  0xd8   :  { %vm50_vm13 = vcmp.eq.s32.totalorder %v46_v18, %v41_v3 }
  0xd9   :  { %450 = vmatprep.mubr.msk.f32.mxu0 %vm50_vm13, %v638_v19 }
  0xda   :  { %451 = vmatmul.mubr.msk.f32.vlgmr.msra.gmra.mrb[0].mxu0 %vm51_vm2, %v638_v19 }
 0x1a9   :  { %v417_v20 = vpop.f32.mrb[0].mxu1 }
 0x1aa   :  { %v237_v21 = vpop.f32.mrb[1].mxu1 }
 0x1ad   :  { %v452_v22 = vpop.f32.mrb[0].mxu0 }
 0x1ae   :  { %v318_v23 = vadd.f32 %v452_v22, %v417_v20  ;;  %v312_v24 = vpop.f32.mrb[1].mxu0 }
 0x1af   :  { %v313_v25 = vadd.f32 %v312_v24, %v237_v21 }
 0x1b0   :  { %322 = vst [vmem:[#allocation7 + $0x8] sm:$0xff] %v318_v23 }
 0x1b1   :  { %321 = vst [vmem:[#allocation7] sm:$0xff] %v313_v25 }
 0x1b2   :  { %607 = shalt.err (!%p604_p6)
}
 0x1b3   :  { %s608_s10 = scalar_lea.hbm %s724_s2, 256 }
 0x1b4   :  { %p609_p7 = scmp.ne.s32.totalorder %s724_s2, %s608_s10  ;;  %p612_p8 = scmp.lt.u32.totalorder %s608_s10, %s724_s2 }
 0x1b6   :  { %p614_p9 = pnand %p612_p8, %p609_p7 }
 0x1b8   :  { %617 = shalt.err (!%p614_p9)
}
 0x1b9   :  { %334 = dma.vmem_to_hbm [thread:$0]  %s329_s6, 256, %s724_s2, [#allocation4], %s625_s19, %s625_s19, %s626_s20  }
 0x1ba   :  { %622 = dma.done.wait [#allocation4], 256  }
 0x1bb   :  { %623 = vsyncadd [#allocation4], 4294967040 }
 0x1bc   :  { %338 = vsyncpa [#allocation3], 1 }
 0x1bd   :  { %339 = vsyncpa [#allocation6], 1 }
 0x1be   :  { %340 = vsyncpa [#allocation4], 1 }

</bundles_post_ra>
